<compile_context>
chip_gen: v5e
topology: v5e:2x2
jax: 0.10.0
libtpu: 0.0.40
codegen_flags: <defaults>
</compile_context>

<pallas_src>
import functools

import jax
import jax.numpy as jnp
from jax.experimental import pallas as pl
from jax.experimental.pallas import tpu as pltpu


def _normalize_kernel(scale_ref, bias_ref, x_ref, o_ref, *, block_rows):
    # scale_ref / bias_ref : VMEM (R, 1) float32, resident across the grid.
    # x_ref / o_ref        : VMEM (block_rows, block_cols) image tile.
    if scale_ref.shape[0] == block_rows:
        # Single row-block: read the whole resident parameter vectors.
        s = scale_ref[...]
        b = bias_ref[...]
    else:
        # Multiple row-blocks: slice the resident params for this row-block.
        r0 = pl.multiple_of(pl.program_id(0) * block_rows, block_rows)
        s = scale_ref[pl.ds(r0, block_rows), :]
        b = bias_ref[pl.ds(r0, block_rows), :]
    # One whole-tile VPU FMA; (rows, 1) broadcasts across lanes.  The astype
    # makes this correct for bf16 (etc.) images since scale/bias are f32.
    o_ref[...] = (x_ref[...] * s + b).astype(o_ref.dtype)


def _vmem_budget():
    """(max_tile_bytes, vmem_limit_bytes) tuned per TPU generation."""
    tile, limit = 3 << 20, 32 << 20            # safe on v5e (16 MiB scoped default)
    try:
        vmem = int(pltpu.get_tpu_info().vmem_capacity_bytes)
        if vmem <= (64 << 20):                 # v7x: 64 MiB physical VMEM per TC
            tile, limit = 6 << 20, 44 << 20    # shrink the per-step overhead share
    except Exception:                          # best effort; conservative fallback
        pass
    return tile, limit


def _choose_tiles(R, HW, itemsize, max_tile_bytes):
    """Pick (block_rows, block_cols).

    Lane (last) dim: multiple of 128 dividing HW, or full HW.
    Sublane dim: multiple of the dtype's packed sublane tile dividing R, or R.
    Tile stays under `max_tile_bytes`; prefer >=2 grid steps for v7x dual-TC.
    """
    sub = 8 * max(1, 4 // max(itemsize, 1))    # 8 for f32, 16 for bf16, 32 for int8
    if R % sub == 0:
        row_cands = [r for r in range(sub, R + 1, sub) if R % r == 0]
    else:
        row_cands = [R]                        # full-extent block is always legal
    if HW % 128 == 0:
        col_cands = [c for c in range(128, HW + 1, 128) if HW % c == 0]
    else:
        col_cands = [HW]                       # full-extent block is always legal

    block_cols = col_cands[0]
    for c in col_cands:
        if row_cands[0] * c * itemsize <= max_tile_bytes:
            block_cols = max(block_cols, c)
    block_rows = row_cands[0]
    for r in row_cands:
        if r * block_cols * itemsize <= max_tile_bytes:
            block_rows = max(block_rows, r)

    # Guarantee >=2 "parallel" grid steps when splittable so both v7x
    # TensorCores get work (no-op on single-TC v5e / v6e).  Prefer splitting
    # rows so the lane dim stays a large multiple of 128 (dense stores).
    if block_rows == R and block_cols == HW:
        if R % (2 * sub) == 0:
            block_rows = R // 2                # still a multiple of `sub`
        elif HW % 256 == 0:
            block_cols = HW // 2               # still a multiple of 128
    return block_rows, block_cols


def pallas_normalize(x, mean, std):
    """Per-channel Normalize (the wrapped transform).  x: (N, C, H, W)."""
    N, C, H, W = x.shape
    R, HW = N * C, H * W
    x2 = x.reshape(R, HW)

    # Affine form of Normalize, expanded to one (scale, bias) pair per row.
    mean = jnp.asarray(mean, jnp.float32)
    std = jnp.asarray(std, jnp.float32)
    scale_r = jnp.tile(1.0 / std, (N,)).reshape(R, 1)      # row r -> channel r % C
    bias_r = jnp.tile(-mean / std, (N,)).reshape(R, 1)

    max_tile_bytes, vmem_limit = _vmem_budget()
    block_rows, block_cols = _choose_tiles(R, HW, x.dtype.itemsize, max_tile_bytes)
    grid = (R // block_rows, HW // block_cols)

    out2 = pl.pallas_call(
        functools.partial(_normalize_kernel, block_rows=block_rows),
        out_shape=jax.ShapeDtypeStruct((R, HW), x.dtype),
        grid=grid,
        in_specs=[
            pl.BlockSpec((R, 1), lambda i, j: (0, 0)),      # scale: VMEM-resident
            pl.BlockSpec((R, 1), lambda i, j: (0, 0)),      # bias:  VMEM-resident
            pl.BlockSpec((block_rows, block_cols), lambda i, j: (i, j)),
        ],
        out_specs=pl.BlockSpec((block_rows, block_cols), lambda i, j: (i, j)),
        compiler_params=pltpu.CompilerParams(
            dimension_semantics=("parallel", "parallel"),
            vmem_limit_bytes=vmem_limit),
    )(scale_r, bias_r, x2)
    return out2.reshape(N, C, H, W)


class RandomlyAppliedTransform:
    """Apply `transform` with probability p (host-side draw, like torch)."""

    def __init__(self, transform, p=0.5):
        self.transform = transform
        self.p = p

    def __call__(self, img, key):
        # Host-side Bernoulli, mirroring `torch.rand(1).item() < p`: the skip
        # path returns `img` untouched -> zero kernel launches, zero HBM copies.
        if float(jax.random.uniform(key, ())) < self.p:
            return self.transform(img)
        return img


if __name__ == "__main__":
    key = jax.random.PRNGKey(0)
    kx, kp = jax.random.split(key)

    N, C, H, W = 2, 4, 16, 16
    x = jax.random.normal(kx, (N, C, H, W), dtype=jnp.float32)

    # Deterministic parameters of the wrapped transform (per-channel Normalize).
    mean = jnp.linspace(-0.5, 0.5, C, dtype=jnp.float32)
    std = jnp.linspace(0.5, 1.25, C, dtype=jnp.float32)

    normalize = functools.partial(pallas_normalize, mean=mean, std=std)
    rat = RandomlyAppliedTransform(normalize, p=0.5)

    ref_t = (x - mean[None, :, None, None]) / std[None, :, None, None]

    # Randomized call (may take either branch); verify against the same draw.
    out_rand = jax.block_until_ready(rat(x, kp))
    applied = float(jax.random.uniform(kp, ())) < rat.p
    ref_rand = ref_t if applied else x
    assert out_rand.shape == x.shape and out_rand.dtype == x.dtype
    assert jnp.allclose(out_rand, ref_rand, atol=1e-5, rtol=1e-5)

    # Force the kernel (apply) path at least once.
    out_on = jax.block_until_ready(normalize(x))
    assert jnp.allclose(out_on, ref_t, atol=1e-5, rtol=1e-5)

    # Skip path is a true Python-level identity: no device work at all.
    out_off = x

    # Larger case exercises multiple row-blocks (resident scale/bias sliced
    # in-kernel with pl.ds) and the 2-D parallel grid.
    xb_big = jax.random.normal(jax.random.PRNGKey(1), (4, C, 32, 32), jnp.float32)
    out_big = jax.block_until_ready(normalize(xb_big))
    ref_big = (xb_big - mean[None, :, None, None]) / std[None, :, None, None]
    assert jnp.allclose(out_big, ref_big, atol=1e-5, rtol=1e-5)

    # Non-f32 images: output dtype is preserved (astype in-kernel).
    x_bf16 = x.astype(jnp.bfloat16)
    out_bf16 = jax.block_until_ready(normalize(x_bf16))
    ref_bf16 = ((x_bf16.astype(jnp.float32) - mean[None, :, None, None])
                / std[None, :, None, None]).astype(jnp.bfloat16)
    assert out_bf16.dtype == jnp.bfloat16
    assert jnp.allclose(out_bf16.astype(jnp.float32),
                        ref_bf16.astype(jnp.float32), atol=2e-2, rtol=2e-2)

    print("KERNEL_OK")
</pallas_src>

<mosaic_0001>
module attributes {stable_mosaic.version = 11 : i64} {
  func.func @_normalize_kernel(%arg0: i32, %arg1: i32, %arg2: memref<8x1xf32, #tpu.memory_space<vmem>>, %arg3: memref<8x1xf32, #tpu.memory_space<vmem>>, %arg4: memref<8x128xf32, #tpu.memory_space<vmem>>, %arg5: memref<8x128xf32, #tpu.memory_space<vmem>>) attributes {dimension_semantics = [#tpu.dimension_semantics<parallel>, #tpu.dimension_semantics<parallel>], iteration_bounds = array<i64: 1, 2>, scalar_prefetch = 0 : i64, scratch_operands = 0 : i64, tpu.core_type = #tpu.core_type<tc>, window_params = [{pipeline_mode = #tpu.pipeline_mode<synchronous>, transform_indices = @transform_0, window_bounds = array<i64: 8, 1>}, {pipeline_mode = #tpu.pipeline_mode<synchronous>, transform_indices = @transform_1, window_bounds = array<i64: 8, 1>}, {transform_indices = @transform_2, window_bounds = array<i64: 8, 128>}, {transform_indices = @transform_3, window_bounds = array<i64: 8, 128>}]} {
    %c0 = arith.constant 0 : index
    %c0_0 = arith.constant 0 : index
    %0 = vector.load %arg2[%c0, %c0_0] : memref<8x1xf32, #tpu.memory_space<vmem>>, vector<8x1xf32>
    %c0_1 = arith.constant 0 : index
    %c0_2 = arith.constant 0 : index
    %1 = vector.load %arg3[%c0_1, %c0_2] : memref<8x1xf32, #tpu.memory_space<vmem>>, vector<8x1xf32>
    %c0_3 = arith.constant 0 : index
    %c0_4 = arith.constant 0 : index
    %2 = vector.load %arg4[%c0_3, %c0_4] : memref<8x128xf32, #tpu.memory_space<vmem>>, vector<8x128xf32>
    %3 = vector.broadcast %0 : vector<8x1xf32> to vector<8x128xf32>
    %4 = arith.mulf %2, %3 : vector<8x128xf32>
    %5 = vector.broadcast %1 : vector<8x1xf32> to vector<8x128xf32>
    %6 = arith.addf %4, %5 : vector<8x128xf32>
    %c0_5 = arith.constant 0 : index
    %c0_6 = arith.constant 0 : index
    %7 = vector.load %arg5[%c0_5, %c0_6] : memref<8x128xf32, #tpu.memory_space<vmem>>, vector<8x128xf32>
    tpu.vector_store %arg5[%c0_5, %c0_6], %6 {strides = array<i32>} : memref<8x128xf32, #tpu.memory_space<vmem>>, vector<8x128xf32>,
    return
  }
  func.func @transform_0(%arg0: i32, %arg1: i32) -> (i32, i32) {
    %c0_i32 = arith.constant 0 : i32
    %c0_i32_0 = arith.constant 0 : i32
    %c0_i32_1 = arith.constant 0 : i32
    return %c0_i32, %c0_i32_0 : i32, i32
  }
  func.func @transform_1(%arg0: i32, %arg1: i32) -> (i32, i32) {
    %c0_i32 = arith.constant 0 : i32
    %c0_i32_0 = arith.constant 0 : i32
    %c0_i32_1 = arith.constant 0 : i32
    return %c0_i32, %c0_i32_0 : i32, i32
  }
  func.func @transform_2(%arg0: i32, %arg1: i32) -> (i32, i32) {
    %c0_i32 = arith.constant 0 : i32
    return %arg0, %arg1 : i32, i32
  }
  func.func @transform_3(%arg0: i32, %arg1: i32) -> (i32, i32) {
    %c0_i32 = arith.constant 0 : i32
    return %arg0, %arg1 : i32, i32
  }
}

</mosaic_0001>

<bundles_post_ra>
// kernel: tpu_custom_call.1
= control target key start
LH: loop header
LB: loop body
LE: loop exit
PB: predicated region body
PF: predicated region fallthrough
CT: control target
= control target key end

     0   :  { %8 = vsyncpa [#allocation3], 0  ;;  %s575_s0 = inlined_call_operand.vmem [shape: f32[8,1], index: 0, kind: input, shape index: {}]   ;;  %s576_s1 = inlined_call_operand.vmem [shape: f32[8,1], index: 1, kind: input, shape index: {}]   ;;  %s577_s2 = inlined_call_operand.vmem [shape: f32[8,256], index: 2, kind: input, shape index: {}]   ;;  %s578_s3 = inlined_call_operand.hbm [shape: f32[8,256], index: 3, kind: output, shape index: {}]  }
   0x1   :  { %10 = vsyncpa [#allocation3 + $0x1], 0  ;;  %s472_s12 = smov 0   ;;  %s474_s13 = smov 0  }
   0x2   :  { %s476_s14 = smov 0   ;;  %s478_s15 = smov 0  }
   0x3   :  { %s480_s16 = smov 0   ;;  %s482_s17 = smov 0  }
   0x4 LB: > { %s303_s18 = sadd.s32 4294967295, %s449_s17   ;;  %s304_s19 = sadd.s32 4294967294, %s449_s17   ;;  %s449_s17 = sphi %s482_s17, %s16_s17   ;;  %s445_s16 = sphi %s480_s16, %s585_s16   ;;  %s441_s15 = sphi %s478_s15, %s584_s15   ;;  %s437_s14 = sphi %s476_s14, %s583_s14   ;;  %s433_s13 = sphi %s474_s13, %s582_s13   ;;  %s429_s12 = sphi %s472_s12, %s581_s12  }
   0x5   : > { %s25_s20 = sadd.s32 1, %s445_s16  ;;  %s107_s21 = sadd.s32 1, %s437_s14 }
   0x6   : > { %p26_p0 = scmp.ge.s32.totalorder %s25_s20, 2  ;;  %p117_p1 = scmp.ne.s32.totalorder %s437_s14, %s433_s13 }
   0x7   : > { %p118_p2 = scmp.eq.s32.totalorder %s303_s18, 1  ;;  %p123_p3 = scmp.ne.s32.totalorder %s433_s13, %s429_s12 }
   0x8   : > { %s587_s20 = smov (%p26_p0, %s25_s20), 0  ;;  %p124_p5 = scmp.eq.s32.totalorder %s304_s19, 1 }
   0x9   : > { %p512_p4 = por %p118_p2, %p117_p1  ;;  %s103_s23 = ssub.s32 %s445_s16, %s587_s20 }
   0xa   : > { %p307_p6 = scmp.ge.s32.totalorder %s449_s17, 1  ;;  %p105_p7 = scmp.eq.s32.totalorder %s103_s23, 0 }
   0xb   : > { %p519_p8 = por %p124_p5, %p123_p3  ;;  %p159_p9 = scmp.lt.s32.totalorder %s449_s17, 3 }
   0xc   : > { %s525_s25 = scalar_select %p105_p7, %s437_s14, %s107_s21  }
   0xd   : > { %p160_p10 = pnand %p307_p6, %p159_p9 }
   0xe   : > { %p188_p11 = scmp.lt.s32.totalorder (!%p160_p10), %s441_s15, 1  ;;  %s183_s4 = sand.u32 (!%p160_p10), 1, %s433_s13  }
   0xf   : > { %163 = sbr.rel (%p160_p10) target bundleno = 150 (0x96), region = 32  ;;  %s308_s6 = sshll.u32 (!%p160_p10), %s183_s4, 3 }
  0x10   : > { %s311_s7 = sshll.u32 (!%p160_p10), %s441_s15, 3  ;;  %s185_s21 = scalar_lea.vmem (!%p160_p10), [#allocation2], %s308_s6 }
  0x11   : > { %s223_s19 = scalar_lea.hbm (!%p160_p10), %s578_s3, %s311_s7  ;;  %s225_s23 = sshll.u32 (!%p160_p10), %s185_s21, 4  ;;  %s226_s23 = int_to_ptr.vmem [resolvable:$true] %s225_s23 }
  0x12   : > { %s227_s26 = sshll.u32 (!%p160_p10), %s223_s19, 4  ;;  %s228_s26 = int_to_ptr.hbm [resolvable:$true] %s227_s26 }
  0x13   : > { %s385_s27 = sshra.s32 (!%p160_p10), %s228_s26, 4  ;;  %s386_s27 = int_to_ptr.hbm [resolvable:$true] %s385_s27 }
  0x14   : > { %v194_v0 = vld [vmem:[%s575_s0] sm:$0xff]  ;;  %v451_v1 = vmov 0   ;;  %s189_s30 = scalar_select %p188_p11, %s441_s15, 1 }
  0x15   : > { %370 = vset.pattern.permute.xlu0 %v451_v1  ;;  %v195_v2 = vld [vmem:[%s576_s1] sm:$0xff]  ;;  %s211_s15 = scalar_lea.sflag [#allocation3], %s183_s4  ;;  %s387_s28 = scalar_lea.hbm %s386_s27, 8 }
  0x16   : > { %199 = vperm.xlu0 %370, %v194_v0   ;;  %s309_s5 = sshll.u32 %s189_s30, 3  ;;  %p388_p12 = scmp.ne.s32.totalorder %s386_s27, %s387_s28 }
  0x17   : > { %s193_s10 = scalar_lea.vmem %s577_s2, %s309_s5  ;;  %s391_s5 = scalar_lea.hbm %s578_s3, 16 }
  0x18   : > { %v196_v4 = vld [vmem:[%s193_s10] sm:$0xff]  ;;  %p389_p13 = pnand %p388_p12, %p512_p4  ;;  %p392_p1 = scmp.lt.s32.totalorder %s386_s27, %s578_s3 }
  0x19   : > { %p393_p2 = scmp.lt.s32.totalorder %s391_s5, %s387_s28 }
  0x1a   : > { %p390_p0 = pneg %p389_p13 }
  0x1b   : > { %p394_p3 = por %p393_p2, %p392_p1 }
  0x1d   : > { %p395_p5 = pnand %p394_p3, %p390_p0 }
  0x1e   : > { %205 = vperm.xlu0 %370, %v195_v2  }
  0x88   : > { %v200_v3 = vpop.permute.xlu0 %199 }
  0x89   : > { %v202_v5 = vmul.f32 %v200_v3, %v196_v4 }
  0x90   : > { %v206_v6 = vpop.permute.xlu0 %205 }
  0x91   : > { %v208_v7 = vadd.f32 %v206_v6, %v202_v5 }
  0x93   : > { %209 = vst [vmem:[%s185_s21] sm:$0xff] %v208_v7 }
  0x94   : > { %398 = shalt.err (!%p395_p5)
}
  0x95   : > { %314 = dma.vmem_to_hbm [thread:$0]  (%p512_p4), %s226_s23, 128, %s228_s26, %s211_s15  }
  0x96 PF: > { %p320_p6 = scmp.ge.s32.totalorder %s449_s17, 2  ;;  %s239_s4 = sand.u32 1, %s429_s12  }
  0x97   : > { %s240_s8 = scalar_lea.sflag [#allocation3], %s239_s4 }
  0x98   : > { %p317_p7 = pnand %p320_p6, %p519_p8 }
  0x9a   : > { %p318_p9 = pneg %p317_p7 }
  0x9c   : > { %424 = dma.done.wait (%p318_p9), %s240_s8, 128  }
  0x9d   : > { %426 = vsyncadd (%p318_p9), %s240_s8, 4294967168  ;;  %s16_s17 = sadd.s32 1, %s449_s17   ;;  %s581_s12 = smov %s433_s13 }
  0x9e   : > { %p13_p10 = scmp.ge.s32.totalorder %s16_s17, 4   ;;  %s582_s13 = smov %s437_s14 }
  0x9f   : > { %s583_s14 = smov %s525_s25  ;;  %s584_s15 = smov %s445_s16 }
  0xa0   : > { %s585_s16 = smov %s587_s20  ;;  %15 = sbr.rel (!%p13_p10) target bundleno = 4 (0x4), region = 67 }
  0xa5   :  { %246 = vsyncpa [#allocation3], 1 }
  0xa6   :  { %248 = vsyncpa [#allocation3 + $0x1], 1 }

</bundles_post_ra>
